<compile_context>
chip_gen: v6e
topology: v6e:2x2x1
jax: 0.10.0
libtpu: 0.0.40
codegen_flags: <defaults>
</compile_context>

<pallas_src>
import functools

import jax
import jax.numpy as jnp
from jax.experimental import pallas as pl
from jax.experimental.pallas import tpu as pltpu

NUM_CELL_TYPES = 22
EMB_DIM = 8
HIDDEN = 16

TB_MAX = 512       # batch-tile rows (multiple of 8)
TK_FULL_MAX = 2048 # if input_size <= this, no K tiling
TK_TILE = 1024     # K tile when input_size is large (multiple of 128)


def _round_up(x, m):
    return ((x + m - 1) // m) * m


def contrastive_embed_kernel(
    atac_ref, ct_ref,
    w_atac_ref, b_atac_ref,
    ct_fold_ref, w1_top_ref, b1_ref,
    w2_ref, b2_ref,
    w3_ref, b3_ref,
    out_ref,
    acc_ref,
):
    k = pl.program_id(1)

    # --- K-reduction of the big matmul: acc += atac_tile @ w_atac_tile ------
    @pl.when(k == 0)
    def _():
        acc_ref[...] = jnp.zeros_like(acc_ref)

    acc_ref[...] += jnp.dot(
        atac_ref[...], w_atac_ref[...], preferred_element_type=jnp.float32
    )

    # --- epilogue: bias+ReLU, embedding lookup (as matmul), MLP tail --------
    @pl.when(k == pl.num_programs(1) - 1)
    def _():
        a = jnp.maximum(acc_ref[...] + b_atac_ref[...], 0.0)            # (TB, 8)

        ct = ct_ref[...]                                                # (TB, 1) int32
        iota = jax.lax.broadcasted_iota(
            jnp.int32, (ct.shape[0], NUM_CELL_TYPES), 1
        )
        onehot = (iota == ct).astype(jnp.float32)                       # (TB, 22)

        # x = relu(cat(a, c) @ w1 + b1)  ==  relu(a @ w1_top + onehot @ (emb@w1_bot) + b1)
        x = jnp.maximum(
            jnp.dot(a, w1_top_ref[...], preferred_element_type=jnp.float32)
            + jnp.dot(onehot, ct_fold_ref[...], preferred_element_type=jnp.float32)
            + b1_ref[...],
            0.0,
        )                                                               # (TB, 16)
        x = jnp.maximum(
            jnp.dot(x, w2_ref[...], preferred_element_type=jnp.float32) + b2_ref[...],
            0.0,
        )                                                               # (TB, 16)
        x = jnp.maximum(
            jnp.dot(x, w3_ref[...], preferred_element_type=jnp.float32) + b3_ref[...],
            0.0,
        )                                                               # (TB, 8)
        out_ref[...] = x


@functools.partial(jax.jit, static_argnames=())
def contrastive_embed(atac, cell_type, params):
    B, D = atac.shape
    cell_type = cell_type.astype(jnp.int32)

    # Fold the embedding table into the bottom half of w1 (removes the concat
    # and one intermediate): c @ w1_bot == onehot @ (emb_tbl @ w1_bot).
    w1 = params["w1"]
    w1_top = w1[:EMB_DIM]                                               # (8, 16)
    w1_bot = w1[EMB_DIM:]                                               # (8, 16)
    ct_fold = jnp.dot(
        params["emb_tbl"], w1_bot, precision=jax.lax.Precision.HIGHEST
    )                                                                   # (22, 16)

    # --- tile sizes ---------------------------------------------------------
    TB = min(TB_MAX, _round_up(B, 8))
    B_pad = _round_up(B, TB)

    if D <= TK_FULL_MAX:
        TK, D_pad = D, D
    else:
        TK = TK_TILE
        D_pad = _round_up(D, TK)

    # --- zero-pad ragged batch / feature dims (semantics-preserving) --------
    atac_p = atac
    w_atac = params["w_atac"]
    ct_p = cell_type
    if D_pad != D:
        atac_p = jnp.pad(atac_p, ((0, 0), (0, D_pad - D)))
        w_atac = jnp.pad(w_atac, ((0, D_pad - D), (0, 0)))
    if B_pad != B:
        atac_p = jnp.pad(atac_p, ((0, B_pad - B), (0, 0)))
        ct_p = jnp.pad(ct_p, ((0, B_pad - B), (0, 0)))

    grid = (B_pad // TB, D_pad // TK)
    const = lambda i, k: (0, 0)  # resident small operands

    in_specs = [
        pl.BlockSpec((TB, TK), lambda i, k: (i, k)),            # atac (streamed)
        pl.BlockSpec((TB, 1), lambda i, k: (i, 0)),             # cell_type
        pl.BlockSpec((TK, EMB_DIM), lambda i, k: (k, 0)),       # w_atac
        pl.BlockSpec((1, EMB_DIM), const),                      # b_atac
        pl.BlockSpec((NUM_CELL_TYPES, HIDDEN), const),          # emb_tbl @ w1_bot
        pl.BlockSpec((EMB_DIM, HIDDEN), const),                 # w1_top
        pl.BlockSpec((1, HIDDEN), const),                       # b1
        pl.BlockSpec((HIDDEN, HIDDEN), const),                  # w2
        pl.BlockSpec((1, HIDDEN), const),                       # b2
        pl.BlockSpec((HIDDEN, EMB_DIM), const),                 # w3
        pl.BlockSpec((1, EMB_DIM), const),                      # b3
    ]
    out_spec = pl.BlockSpec((TB, EMB_DIM), lambda i, k: (i, 0))

    # HBM-bound roofline hint for XLA scheduling around the call.
    cost = pl.CostEstimate(
        flops=2 * B_pad * D_pad * EMB_DIM
        + 2 * B_pad * (EMB_DIM * HIDDEN + NUM_CELL_TYPES * HIDDEN
                       + HIDDEN * HIDDEN + HIDDEN * EMB_DIM),
        transcendentals=0,
        bytes_accessed=4 * (B_pad * D_pad + B_pad * EMB_DIM + B_pad + D_pad * EMB_DIM),
    )

    out = pl.pallas_call(
        contrastive_embed_kernel,
        out_shape=jax.ShapeDtypeStruct((B_pad, EMB_DIM), jnp.float32),
        grid_spec=pltpu.PrefetchScalarGridSpec(
            num_scalar_prefetch=0,
            grid=grid,
            in_specs=in_specs,
            out_specs=out_spec,
            scratch_shapes=[pltpu.VMEM((TB, EMB_DIM), jnp.float32)],
        ),
        compiler_params=pltpu.CompilerParams(
            # batch tiles split across v7x's two TensorCores; K is a reduction.
            dimension_semantics=("parallel", "arbitrary"),
            # Sized for v7x's smaller VMEM; tiles above use << 32 MiB even
            # double-buffered (2 * TB * TK * 4B <= 8 MiB).
            vmem_limit_bytes=32 * 1024 * 1024,
        ),
        cost_estimate=cost,
    )(
        atac_p, ct_p,
        w_atac, params["b_atac"],
        ct_fold, w1_top, params["b1"],
        params["w2"], params["b2"],
        params["w3"], params["b3"],
    )
    return out[:B]
    # TODO(synk): output last dim is 8 (<128) -> masked stores; a lane-dense
    # repacked output layout is a further (modest) win when input_size is tiny.


def init_params(key, input_size):
    """Deterministic synthetic parameters (shapes match the PyTorch module)."""
    ks = jax.random.split(key, 9)

    def linear(kw, kb, fan_in, fan_out):
        bound = 1.0 / jnp.sqrt(jnp.float32(fan_in))
        w = jax.random.uniform(kw, (fan_in, fan_out), jnp.float32, -bound, bound)
        b = jax.random.uniform(kb, (1, fan_out), jnp.float32, -bound, bound)
        return w, b

    emb_tbl = jax.random.normal(ks[0], (NUM_CELL_TYPES, EMB_DIM), jnp.float32)
    w_atac, b_atac = linear(ks[1], ks[2], input_size, EMB_DIM)
    w1, b1 = linear(ks[3], ks[4], 2 * EMB_DIM, HIDDEN)
    w2, b2 = linear(ks[5], ks[6], HIDDEN, HIDDEN)
    w3, b3 = linear(ks[7], ks[8], HIDDEN, EMB_DIM)
    return dict(emb_tbl=emb_tbl, w_atac=w_atac, b_atac=b_atac,
                w1=w1, b1=b1, w2=w2, b2=b2, w3=w3, b3=b3)


def reference(atac, cell_type, p):
    a = jax.nn.relu(atac @ p["w_atac"] + p["b_atac"])
    c = p["emb_tbl"][cell_type[:, 0]]
    x = jnp.concatenate([a, c], axis=1)
    x = jax.nn.relu(x @ p["w1"] + p["b1"])
    x = jax.nn.relu(x @ p["w2"] + p["b2"])
    x = jax.nn.relu(x @ p["w3"] + p["b3"])
    return x


if __name__ == "__main__":
    B = 8
    INPUT_SIZE = 32

    key = jax.random.PRNGKey(0)
    k_params, k_atac, k_ct = jax.random.split(key, 3)

    params = init_params(k_params, INPUT_SIZE)
    atac = jax.random.normal(k_atac, (B, INPUT_SIZE), jnp.float32)
    cell_type = jax.random.randint(k_ct, (B, 1), 0, NUM_CELL_TYPES, jnp.int32)

    out = contrastive_embed(atac, cell_type, params)
    out = jax.block_until_ready(out)

    ref = reference(atac, cell_type, params)
    assert out.shape == (B, EMB_DIM)
    assert jnp.allclose(out, ref, atol=1e-4, rtol=1e-4), float(
        jnp.max(jnp.abs(out - ref))
    )

    print("KERNEL_OK")
</pallas_src>

<mosaic_0001>
module attributes {stable_mosaic.version = 11 : i64} {
  func.func @contrastive_embed_kernel(%arg0: i32, %arg1: i32, %arg2: memref<8x32xf32, #tpu.memory_space<vmem>>, %arg3: memref<8x1xi32, #tpu.memory_space<vmem>>, %arg4: memref<32x8xf32, #tpu.memory_space<vmem>>, %arg5: memref<1x8xf32, #tpu.memory_space<vmem>>, %arg6: memref<22x16xf32, #tpu.memory_space<vmem>>, %arg7: memref<8x16xf32, #tpu.memory_space<vmem>>, %arg8: memref<1x16xf32, #tpu.memory_space<vmem>>, %arg9: memref<16x16xf32, #tpu.memory_space<vmem>>, %arg10: memref<1x16xf32, #tpu.memory_space<vmem>>, %arg11: memref<16x8xf32, #tpu.memory_space<vmem>>, %arg12: memref<1x8xf32, #tpu.memory_space<vmem>>, %arg13: memref<8x8xf32, #tpu.memory_space<vmem>>, %arg14: memref<8x8xf32, #tpu.memory_space<vmem>>) attributes {dimension_semantics = [#tpu.dimension_semantics<parallel>, #tpu.dimension_semantics<arbitrary>], iteration_bounds = array<i64: 1, 1>, scalar_prefetch = 0 : i64, scratch_operands = 1 : i64, tpu.core_type = #tpu.core_type<tc>, window_params = [{transform_indices = @transform_0, window_bounds = array<i64: 8, 32>}, {transform_indices = @transform_1, window_bounds = array<i64: 8, 1>}, {transform_indices = @transform_2, window_bounds = array<i64: 32, 8>}, {pipeline_mode = #tpu.pipeline_mode<synchronous>, transform_indices = @transform_3, window_bounds = array<i64: 1, 8>}, {pipeline_mode = #tpu.pipeline_mode<synchronous>, transform_indices = @transform_4, window_bounds = array<i64: 22, 16>}, {pipeline_mode = #tpu.pipeline_mode<synchronous>, transform_indices = @transform_5, window_bounds = array<i64: 8, 16>}, {pipeline_mode = #tpu.pipeline_mode<synchronous>, transform_indices = @transform_6, window_bounds = array<i64: 1, 16>}, {pipeline_mode = #tpu.pipeline_mode<synchronous>, transform_indices = @transform_7, window_bounds = array<i64: 16, 16>}, {pipeline_mode = #tpu.pipeline_mode<synchronous>, transform_indices = @transform_8, window_bounds = array<i64: 1, 16>}, {pipeline_mode = #tpu.pipeline_mode<synchronous>, transform_indices = @transform_9, window_bounds = array<i64: 16, 8>}, {pipeline_mode = #tpu.pipeline_mode<synchronous>, transform_indices = @transform_10, window_bounds = array<i64: 1, 8>}, {transform_indices = @transform_11, window_bounds = array<i64: 8, 8>}]} {
    %c0_i32 = arith.constant 0 : i32
    %0 = arith.cmpi eq, %arg1, %c0_i32 : i32
    %1 = arith.extui %0 : i1 to i32
    %c0_i32_0 = arith.constant 0 : i32
    %2 = arith.cmpi ne, %1, %c0_i32_0 : i32
    scf.if %2 {
      %cst_10 = arith.constant 0.000000e+00 : f32
      %12 = vector.broadcast %cst_10 : f32 to vector<8x8xf32>
      %c0_11 = arith.constant 0 : index
      %c0_12 = arith.constant 0 : index
      %13 = vector.load %arg14[%c0_11, %c0_12] : memref<8x8xf32, #tpu.memory_space<vmem>>, vector<8x8xf32>
      tpu.vector_store %arg14[%c0_11, %c0_12], %12 {strides = array<i32>} : memref<8x8xf32, #tpu.memory_space<vmem>>, vector<8x8xf32>,
    } else {
    }
    %c0 = arith.constant 0 : index
    %c0_1 = arith.constant 0 : index
    %3 = vector.load %arg14[%c0, %c0_1] : memref<8x8xf32, #tpu.memory_space<vmem>>, vector<8x8xf32>
    %c0_2 = arith.constant 0 : index
    %c0_3 = arith.constant 0 : index
    %4 = vector.load %arg2[%c0_2, %c0_3] : memref<8x32xf32, #tpu.memory_space<vmem>>, vector<8x32xf32>
    %c0_4 = arith.constant 0 : index
    %c0_5 = arith.constant 0 : index
    %5 = vector.load %arg4[%c0_4, %c0_5] : memref<32x8xf32, #tpu.memory_space<vmem>>, vector<32x8xf32>
    %cst = arith.constant dense<0.000000e+00> : vector<8x8xf32>
    %6 = tpu.matmul %4, %5, %cst {dimension_numbers = #tpu.dot_dimension_numbers<[1], [0], [0], [1], [0, 0, 1, 1], [], []>} : vector<8x32xf32>, vector<32x8xf32>, vector<8x8xf32> -> vector<8x8xf32>
    %7 = arith.addf %3, %6 : vector<8x8xf32>
    %c0_6 = arith.constant 0 : index
    %c0_7 = arith.constant 0 : index
    %8 = vector.load %arg14[%c0_6, %c0_7] : memref<8x8xf32, #tpu.memory_space<vmem>>, vector<8x8xf32>
    tpu.vector_store %arg14[%c0_6, %c0_7], %7 {strides = array<i32>} : memref<8x8xf32, #tpu.memory_space<vmem>>, vector<8x8xf32>,
    %c0_i32_8 = arith.constant 0 : i32
    %9 = arith.cmpi eq, %arg1, %c0_i32_8 : i32
    %10 = arith.extui %9 : i1 to i32
    %c0_i32_9 = arith.constant 0 : i32
    %11 = arith.cmpi ne, %10, %c0_i32_9 : i32
    scf.if %11 {
      %c0_10 = arith.constant 0 : index
      %c0_11 = arith.constant 0 : index
      %12 = vector.load %arg14[%c0_10, %c0_11] : memref<8x8xf32, #tpu.memory_space<vmem>>, vector<8x8xf32>
      %c0_12 = arith.constant 0 : index
      %c0_13 = arith.constant 0 : index
      %13 = vector.load %arg5[%c0_12, %c0_13] : memref<1x8xf32, #tpu.memory_space<vmem>>, vector<1x8xf32>
      %14 = vector.broadcast %13 : vector<1x8xf32> to vector<8x8xf32>
      %15 = arith.addf %12, %14 : vector<8x8xf32>
      %cst_14 = arith.constant 0.000000e+00 : f32
      %16 = vector.broadcast %cst_14 : f32 to vector<8x8xf32>
      %17 = arith.maximumf %15, %16 : vector<8x8xf32>
      %c0_15 = arith.constant 0 : index
      %c0_16 = arith.constant 0 : index
      %18 = vector.load %arg3[%c0_15, %c0_16] : memref<8x1xi32, #tpu.memory_space<vmem>>, vector<8x1xi32>
      %19 = tpu.iota {dimensions = array<i32: 1>} : vector<8x22xi32>
      %20 = vector.broadcast %18 : vector<8x1xi32> to vector<8x22xi32>
      %21 = arith.cmpi eq, %19, %20 : vector<8x22xi32>
      %22 = arith.extui %21 : vector<8x22xi1> to vector<8x22xi32>
      %23 = arith.sitofp %22 : vector<8x22xi32> to vector<8x22xf32>
      %c0_17 = arith.constant 0 : index
      %c0_18 = arith.constant 0 : index
      %24 = vector.load %arg7[%c0_17, %c0_18] : memref<8x16xf32, #tpu.memory_space<vmem>>, vector<8x16xf32>
      %cst_19 = arith.constant dense<0.000000e+00> : vector<8x16xf32>
      %25 = tpu.matmul %17, %24, %cst_19 {dimension_numbers = #tpu.dot_dimension_numbers<[1], [0], [0], [1], [0, 0, 1, 1], [], []>} : vector<8x8xf32>, vector<8x16xf32>, vector<8x16xf32> -> vector<8x16xf32>
      %c0_20 = arith.constant 0 : index
      %c0_21 = arith.constant 0 : index
      %26 = vector.load %arg6[%c0_20, %c0_21] : memref<22x16xf32, #tpu.memory_space<vmem>>, vector<22x16xf32>
      %cst_22 = arith.constant dense<0.000000e+00> : vector<8x16xf32>
      %27 = tpu.matmul %23, %26, %cst_22 {dimension_numbers = #tpu.dot_dimension_numbers<[1], [0], [0], [1], [0, 0, 1, 1], [], []>} : vector<8x22xf32>, vector<22x16xf32>, vector<8x16xf32> -> vector<8x16xf32>
      %28 = arith.addf %25, %27 : vector<8x16xf32>
      %c0_23 = arith.constant 0 : index
      %c0_24 = arith.constant 0 : index
      %29 = vector.load %arg8[%c0_23, %c0_24] : memref<1x16xf32, #tpu.memory_space<vmem>>, vector<1x16xf32>
      %30 = vector.broadcast %29 : vector<1x16xf32> to vector<8x16xf32>
      %31 = arith.addf %28, %30 : vector<8x16xf32>
      %cst_25 = arith.constant 0.000000e+00 : f32
      %32 = vector.broadcast %cst_25 : f32 to vector<8x16xf32>
      %33 = arith.maximumf %31, %32 : vector<8x16xf32>
      %c0_26 = arith.constant 0 : index
      %c0_27 = arith.constant 0 : index
      %34 = vector.load %arg9[%c0_26, %c0_27] : memref<16x16xf32, #tpu.memory_space<vmem>>, vector<16x16xf32>
      %cst_28 = arith.constant dense<0.000000e+00> : vector<8x16xf32>
      %35 = tpu.matmul %33, %34, %cst_28 {dimension_numbers = #tpu.dot_dimension_numbers<[1], [0], [0], [1], [0, 0, 1, 1], [], []>} : vector<8x16xf32>, vector<16x16xf32>, vector<8x16xf32> -> vector<8x16xf32>
      %c0_29 = arith.constant 0 : index
      %c0_30 = arith.constant 0 : index
      %36 = vector.load %arg10[%c0_29, %c0_30] : memref<1x16xf32, #tpu.memory_space<vmem>>, vector<1x16xf32>
      %37 = vector.broadcast %36 : vector<1x16xf32> to vector<8x16xf32>
      %38 = arith.addf %35, %37 : vector<8x16xf32>
      %cst_31 = arith.constant 0.000000e+00 : f32
      %39 = vector.broadcast %cst_31 : f32 to vector<8x16xf32>
      %40 = arith.maximumf %38, %39 : vector<8x16xf32>
      %c0_32 = arith.constant 0 : index
      %c0_33 = arith.constant 0 : index
      %41 = vector.load %arg11[%c0_32, %c0_33] : memref<16x8xf32, #tpu.memory_space<vmem>>, vector<16x8xf32>
      %cst_34 = arith.constant dense<0.000000e+00> : vector<8x8xf32>
      %42 = tpu.matmul %40, %41, %cst_34 {dimension_numbers = #tpu.dot_dimension_numbers<[1], [0], [0], [1], [0, 0, 1, 1], [], []>} : vector<8x16xf32>, vector<16x8xf32>, vector<8x8xf32> -> vector<8x8xf32>
      %c0_35 = arith.constant 0 : index
      %c0_36 = arith.constant 0 : index
      %43 = vector.load %arg12[%c0_35, %c0_36] : memref<1x8xf32, #tpu.memory_space<vmem>>, vector<1x8xf32>
      %44 = vector.broadcast %43 : vector<1x8xf32> to vector<8x8xf32>
      %45 = arith.addf %42, %44 : vector<8x8xf32>
      %cst_37 = arith.constant 0.000000e+00 : f32
      %46 = vector.broadcast %cst_37 : f32 to vector<8x8xf32>
      %47 = arith.maximumf %45, %46 : vector<8x8xf32>
      %c0_38 = arith.constant 0 : index
      %c0_39 = arith.constant 0 : index
      %48 = vector.load %arg13[%c0_38, %c0_39] : memref<8x8xf32, #tpu.memory_space<vmem>>, vector<8x8xf32>
      tpu.vector_store %arg13[%c0_38, %c0_39], %47 {strides = array<i32>} : memref<8x8xf32, #tpu.memory_space<vmem>>, vector<8x8xf32>,
    } else {
    }
    return
  }
  func.func @transform_0(%arg0: i32, %arg1: i32) -> (i32, i32) {
    %c0_i32 = arith.constant 0 : i32
    return %arg0, %arg1 : i32, i32
  }
  func.func @transform_1(%arg0: i32, %arg1: i32) -> (i32, i32) {
    %c0_i32 = arith.constant 0 : i32
    %c0_i32_0 = arith.constant 0 : i32
    return %arg0, %c0_i32 : i32, i32
  }
  func.func @transform_2(%arg0: i32, %arg1: i32) -> (i32, i32) {
    %c0_i32 = arith.constant 0 : i32
    %c0_i32_0 = arith.constant 0 : i32
    return %arg1, %c0_i32 : i32, i32
  }
  func.func @transform_3(%arg0: i32, %arg1: i32) -> (i32, i32) {
    %c0_i32 = arith.constant 0 : i32
    %c0_i32_0 = arith.constant 0 : i32
    %c0_i32_1 = arith.constant 0 : i32
    return %c0_i32, %c0_i32_0 : i32, i32
  }
  func.func @transform_4(%arg0: i32, %arg1: i32) -> (i32, i32) {
    %c0_i32 = arith.constant 0 : i32
    %c0_i32_0 = arith.constant 0 : i32
    %c0_i32_1 = arith.constant 0 : i32
    return %c0_i32, %c0_i32_0 : i32, i32
  }
  func.func @transform_5(%arg0: i32, %arg1: i32) -> (i32, i32) {
    %c0_i32 = arith.constant 0 : i32
    %c0_i32_0 = arith.constant 0 : i32
    %c0_i32_1 = arith.constant 0 : i32
    return %c0_i32, %c0_i32_0 : i32, i32
  }
  func.func @transform_6(%arg0: i32, %arg1: i32) -> (i32, i32) {
    %c0_i32 = arith.constant 0 : i32
    %c0_i32_0 = arith.constant 0 : i32
    %c0_i32_1 = arith.constant 0 : i32
    return %c0_i32, %c0_i32_0 : i32, i32
  }
  func.func @transform_7(%arg0: i32, %arg1: i32) -> (i32, i32) {
    %c0_i32 = arith.constant 0 : i32
    %c0_i32_0 = arith.constant 0 : i32
    %c0_i32_1 = arith.constant 0 : i32
    return %c0_i32, %c0_i32_0 : i32, i32
  }
  func.func @transform_8(%arg0: i32, %arg1: i32) -> (i32, i32) {
    %c0_i32 = arith.constant 0 : i32
    %c0_i32_0 = arith.constant 0 : i32
    %c0_i32_1 = arith.constant 0 : i32
    return %c0_i32, %c0_i32_0 : i32, i32
  }
  func.func @transform_9(%arg0: i32, %arg1: i32) -> (i32, i32) {
    %c0_i32 = arith.constant 0 : i32
    %c0_i32_0 = arith.constant 0 : i32
    %c0_i32_1 = arith.constant 0 : i32
    return %c0_i32, %c0_i32_0 : i32, i32
  }
  func.func @transform_10(%arg0: i32, %arg1: i32) -> (i32, i32) {
    %c0_i32 = arith.constant 0 : i32
    %c0_i32_0 = arith.constant 0 : i32
    %c0_i32_1 = arith.constant 0 : i32
    return %c0_i32, %c0_i32_0 : i32, i32
  }
  func.func @transform_11(%arg0: i32, %arg1: i32) -> (i32, i32) {
    %c0_i32 = arith.constant 0 : i32
    %c0_i32_0 = arith.constant 0 : i32
    return %arg0, %c0_i32 : i32, i32
  }
}

</mosaic_0001>

<bundles_post_ra>
// kernel: contrastive_embed.1
= control target key start
LH: loop header
LB: loop body
LE: loop exit
PB: predicated region body
PF: predicated region fallthrough
CT: control target
= control target key end

     0   :  { %v590_v1 = vmov 0.0   ;;  %vm591_vm0 = vmmov 0   ;;  %vm43_vm1 = vcmask 64512   ;;  %v592_v4 = vmov 0   ;;  %s739_s0 = inlined_call_operand.vmem [shape: f32[8,32], index: 0, kind: input, shape index: {}]   ;;  %s740_s1 = inlined_call_operand.vmem [shape: s32[8,1], index: 1, kind: input, shape index: {}]   ;;  %s741_s2 = inlined_call_operand.vmem [shape: f32[32,8], index: 2, kind: input, shape index: {}]   ;;  %s742_s3 = inlined_call_operand.vmem [shape: f32[1,8], index: 3, kind: input, shape index: {}]   ;;  %s743_s4 = inlined_call_operand.vmem [shape: f32[22,16], index: 4, kind: input, shape index: {}]   ;;  %s744_s5 = inlined_call_operand.vmem [shape: f32[8,16], index: 5, kind: input, shape index: {}]   ;;  %s745_s6 = inlined_call_operand.vmem [shape: f32[1,16], index: 6, kind: input, shape index: {}]   ;;  %s746_s7 = inlined_call_operand.vmem [shape: f32[16,16], index: 7, kind: input, shape index: {}]   ;;  %s747_s8 = inlined_call_operand.vmem [shape: f32[1,16], index: 8, kind: input, shape index: {}]   ;;  %s748_s9 = inlined_call_operand.vmem [shape: f32[16,8], index: 9, kind: input, shape index: {}]   ;;  %s749_s10 = inlined_call_operand.vmem [shape: f32[1,8], index: 10, kind: input, shape index: {}]   ;;  %s750_s11 = inlined_call_operand.hbm [shape: f32[8,8], index: 11, kind: output, shape index: {}]  }
   0x1   :  { %v50_v0 = vld [vmem:[%s741_s2 + $0x18] sm:$0xff]  ;;  %524 = vmatprep.subr.mxu0 %v590_v1  ;;  %v49_v2 = vld [vmem:[%s741_s2 + $0x10] sm:$0xff]  ;;  %532 = vmatprep.mubr.msk.f32.mxu0 %vm591_vm0, %v590_v1  ;;  %v141_v3 = vld [vmem:[%s740_s1] sm:$0xff]  ;;  %44 = vst.msk [vmem:[#allocation2] sm:$0xff] %vm43_vm1, %v590_v1 }
   0x2   :  { %525 = vmatpush3.msra.mxu0 %v50_v0  ;;  %567 = vset.pattern.permute.xlu0 %v592_v4 }
   0x3   :  { %16 = vsyncpa [#allocation4], 0  ;;  %526 = vmatprep.subr.mxu0 %v590_v1  ;;  %v48_v5 = vld [vmem:[%s741_s2 + $0x8] sm:$0xff]  ;;  %145 = vperm.xlu0 %567, %v141_v3   ;;  %v47_v6 = vld [vmem:[%s741_s2] sm:$0xff]  ;;  %vm51_vm2 = vcmask 261120   ;;  %vm158_vm3 = vcmask 1045504   ;;  %v142_v11 = vlaneseq }
   0x4   :  { %527 = vmatpush3.msra.mxu0 %v49_v2  ;;  %535 = vmatprep.subr.mxu1 %v590_v1  ;;  %v46_v7 = vld [vmem:[%s739_s0] sm:$0xff]  ;;  %v153_v8 = vld [vmem:[%s743_s4 + $0x10] sm:$0x3f]  ;;  %v152_v9 = vld [vmem:[%s743_s4 + $0x8] sm:$0xff]  ;;  %vm154_vm4 = vcmask 179200   ;;  %vm323_vm6 = vcmask 130048  }
   0x5   :  { %528 = vmatprep.subr.mxu0 %v590_v1  ;;  %541 = vmatprep.mubr.msk.f32.mxu1 %vm591_vm0, %v590_v1  ;;  %v151_v10 = vld [vmem:[%s743_s4] sm:$0xff]  ;;  %v143_v12 = vand.u32 127, %v142_v11  ;;  %v315_v24 = vld [vmem:[%s746_s7 + $0x8] sm:$0xff]  ;;  %s593_s25 = smov [#allocation3]  }
   0x6   :  { %529 = vmatpush3.msra.mxu0 %v48_v5  ;;  %536 = vmatpush3.msk.msra.mxu1 %vm158_vm3, %v153_v8  ;;  %v150_v14 = vld [vmem:[%s744_s5] sm:$0xff]  ;;  %v399_v34 = vld [vmem:[%s748_s9 + $0x8] sm:$0xff]  ;;  %s488_s26 = sshll.u32 %s593_s25, 4  ;;  %s489_s26 = int_to_ptr.vmem [resolvable:$true] %s488_s26 }
   0x7   :  { %530 = vmatprep.subr.mxu0 %v590_v1  ;;  %537 = vmatprep.subr.mxu1 %v590_v1  ;;  %v497_v20 = vld [vmem:[%s742_s3] ss:$0 sm:$0xff]  ;;  %p573_p1 = scmp.lt.s32.totalorder %s489_s26, %s489_s26 }
   0x8   :  { %531 = vmatpush3.msra.mxu0 %v47_v6  ;;  %538 = vmatpush3.msra.mxu1 %v152_v9  ;;  %v45_v16 = vld [vmem:[#allocation2] sm:$0xff] }
   0x9   :  { %533 = vmatmul.mubr.msk.f32.vlgmr.msra.gmra.mxu0 %vm51_vm2, %v46_v7  ;;  %549 = vmatprep.subr.mxu0 %v590_v1  ;;  %v314_v25 = vld [vmem:[%s746_s7] sm:$0xff] }
   0xa   :  { %553 = vmatprep.mubr.msk.f32.mxu0 %vm591_vm0, %v590_v1  ;;  %539 = vmatprep.subr.mxu1 %v590_v1  ;;  %v502_v29 = vld [vmem:[%s745_s6] ss:$0 sm:$0xff] }
   0xb   :  { %540 = vmatpush3.msra.mxu1 %v151_v10  ;;  %550 = vmatpush3.msra.mxu0 %v315_v24  ;;  %v398_v35 = vld [vmem:[%s748_s9] sm:$0xff]  ;;  %s568_s9 = scalar_lea.vmem %s489_s26, 128 }
   0xc   :  { %544 = vmatprep.subr.mxu1 %v590_v1  ;;  %551 = vmatprep.subr.mxu0 %v590_v1  ;;  %v503_v36 = vld [vmem:[%s747_s8] ss:$0 sm:$0xff]  ;;  %p569_p0 = scmp.ne.s32.totalorder %s489_s26, %s568_s9  ;;  %p574_p2 = scmp.lt.s32.totalorder %s568_s9, %s568_s9 }
   0xd   :  { %552 = vmatpush3.msra.mxu0 %v314_v25  ;;  %v505_v41 = vld [vmem:[%s749_s10] ss:$0 sm:$0xff] }
   0xe   :  { %p575_p3 = por %p574_p2, %p573_p1 }
  0x10   :  { %p576_p4 = pnand %p575_p3, %p569_p0 }
  0x7e   :  { %v146_v13 = vpop.permute.xlu0 %145 }
  0x7f   :  { %vm147_vm5 = vcmp.eq.s32.totalorder %v143_v12, %v146_v13 }
  0x80   :  { %v498_v15 = vsel %vm147_vm5, 1.0, %v590_v1 }
  0x81   :  { %542 = vmatmul.mubr.msk.f32.vlgmr.msra.gmra.mxu1 %vm154_vm4, %v498_v15 }
  0x82   :  { %545 = vmatpush3.msra.mxu1 %v150_v14  ;;  %546 = vmatprep.mubr.msk.f32.mxu1 %vm591_vm0, %v590_v1 }
  0x83   :  { %556 = vmatprep.subr.mxu1 %v590_v1 }
  0xc9   :  { %v121_v17 = vpop.f32.mrf.mxu0 }
  0xca   :  { %v125_v18 = vadd.f32 %v121_v17, %v45_v16 }
  0xcb   :  { %v534_v19 = vpop.f32.mrf.mxu0 }
  0xcc   :  { %127 = vst.msk [vmem:[#allocation2] sm:$0xff] %vm43_vm1, %v125_v18 }
  0xd3   :  { %v131_v21 = vld [vmem:[#allocation2] sm:$0xff] }
  0xd4   :  { %v139_v22 = vadd.f32 %v497_v20, %v131_v21 }
  0xd6   :  { %v140_v23 = vmax.f32 %v139_v22, 0.0 }
  0xd8   :  { %547 = vmatmul.mubr.msk.f32.vlgmr.msra.gmra.mxu1 %vm43_vm1, %v140_v23 }
  0xd9   :  { %560 = vmatprep.mubr.msk.f32.mxu1 %vm591_vm0, %v590_v1  ;;  %557 = vmatpush3.msra.mxu1 %v399_v34 }
  0xda   :  { %558 = vmatprep.subr.mxu1 %v590_v1 }
  0xdb   :  { %559 = vmatpush3.msra.mxu1 %v398_v35 }
 0x141   :  { %v228_v26 = vpop.f32.mrf.mxu1 }
 0x143   :  { %v543_v27 = vpop.f32.mrf.mxu1 }
 0x198   :  { %v301_v28 = vpop.f32.mrf.mxu1 }
 0x199   :  { %v302_v30 = vadd.f32 %v301_v28, %v228_v26 }
 0x19a   :  { %v548_v31 = vpop.f32.mrf.mxu1 }
 0x19b   :  { %v312_v32 = vadd.f32 %v502_v29, %v302_v30 }
 0x19d   :  { %v313_v33 = vmax.f32 %v312_v32, 0.0 }
 0x19f   :  { %554 = vmatmul.mubr.msk.f32.vlgmr.msra.gmra.mxu0 %vm323_vm6, %v313_v33 }
 0x25f   :  { %v393_v37 = vpop.f32.mrf.mxu0 }
 0x260   :  { %v394_v38 = vadd.f32 %v503_v36, %v393_v37 }
 0x261   :  { %v555_v39 = vpop.f32.mrf.mxu0 }
 0x262   :  { %v397_v40 = vmax.f32 %v394_v38, 0.0 }
 0x264   :  { %561 = vmatmul.mubr.msk.f32.vlgmr.msra.gmra.mxu1 %vm323_vm6, %v397_v40 }
 0x324   :  { %v476_v42 = vpop.f32.mrf.mxu1 }
 0x325   :  { %v477_v43 = vadd.f32 %v505_v41, %v476_v42 }
 0x326   :  { %v562_v44 = vpop.f32.mrf.mxu1 }
 0x327   :  { %v480_v45 = vmax.f32 %v477_v43, 0.0 }
 0x329   :  { %481 = vst.msk [vmem:[#allocation3] sm:$0xff] %vm43_vm1, %v480_v45 }
 0x32a   :  { %579 = shalt.err (!%p576_p4)
}
 0x32b   :  { %491 = dma.vmem_to_hbm [thread:$0]  %s489_s26, 128, %s750_s11, [#allocation4]  }
 0x32c   :  { %588 = dma.done.wait [#allocation4], 128  }
 0x32d   :  { %589 = vsyncadd [#allocation4], 4294967168 }
 0x32e   :  { %495 = vsyncpa [#allocation4], 1 }

</bundles_post_ra>
